<compile_context>
chip_gen: v7x
topology: tpu7x:2x2x1
jax: 0.10.0
libtpu: 0.0.40
codegen_flags: <defaults>
</compile_context>

<pallas_src>
import functools

import jax
import jax.numpy as jnp
import numpy as np
from jax import lax
from jax.experimental import pallas as pl
from jax.experimental.pallas import tpu as pltpu

# ----- model hyper-parameters (VAE_Decoder.__init__ args) -----
WORD_COUNT = 64     # word_count
LATENT_DIM = 24     # latent_dim  (!= hidden_dim -> exercises the linear_transform path)
D_MODEL    = 32     # d_model
HIDDEN_DIM = 32     # hidden_dim
OUTPUT_DIM = 64     # output_dim
NUM_LAYERS = 1      # num_layers

# ----- example sizes -----
BATCH = 2
SEQ   = 8

LANES = 128         # TPU lane width; everything is packed/padded to this

# Packed weight-slab row offsets.  Each parameter block is block-diagonal over the batch
# and zero-padded to a (128, 128) tile, so every in-kernel slice is a full-lane,
# sublane-aligned (128, 128) view.
ROW_EMB = 0 * LANES   # embedding table            real (B*V, B*D)
ROW_LT  = 1 * LANES   # latent->hidden Linear^T    real (B*L, B*H)
ROW_IH  = 2 * LANES   # RNN W_ih^T                 real (B*D, B*H)
ROW_HH  = 3 * LANES   # RNN W_hh^T                 real (B*H, B*H)
ROW_FC  = 4 * LANES   # fc W^T                     real (B*H, B*O)
ROW_SEG = 5 * LANES   # softmax segment mask       (B*O, B*O)
WSLAB_ROWS = 6 * LANES

assert max(BATCH * WORD_COUNT, BATCH * LATENT_DIM, BATCH * D_MODEL,
           BATCH * HIDDEN_DIM, BATCH * OUTPUT_DIM) <= LANES


def vae_decoder_kernel(tok_ref, h0_ref, wslab_ref, bslab_ref,
                       probs_ref, hfin_ref, hseq_ref):
    S, B = SEQ, BATCH
    V, O = WORD_COUNT, OUTPUT_DIM
    f32 = jnp.float32

    def wblk(row0):                       # (128, 128) padded parameter block (load at use)
        return wslab_ref[row0:row0 + LANES, :]

    def brow(r):                          # (1, 128) padded bias row
        return bslab_ref[r:r + 1, :]

    # ---- nn.Embedding as one-hot @ block-diag table (batch packed along lanes) ----
    lane = lax.broadcasted_iota(jnp.int32, (S, LANES), 1)             # (S, 128)
    tok_sel = jnp.broadcast_to(tok_ref[:, 0:1], (S, LANES))
    for b in range(1, B):                                             # segment-offset token ids
        tok_sel = jnp.where(lane >= b * V, tok_ref[:, b:b + 1] + b * V, tok_sel)
    onehot = (tok_sel == lane).astype(f32)                            # (S, 128)
    emb_x = jnp.dot(onehot, wblk(ROW_EMB), preferred_element_type=f32)   # (S, 128)

    # ---- hoisted RNN input projection: xw[t] = x_t @ W_ih^T + (b_ih + b_hh) ----
    xw = jnp.dot(emb_x, wblk(ROW_IH), preferred_element_type=f32) + brow(1)  # (S, 128)

    # ---- linear_transform: latent hidden -> Linear + ReLU -> initial RNN hidden ----
    h = jnp.dot(h0_ref[...], wblk(ROW_LT), preferred_element_type=f32) + brow(0)
    h = jnp.maximum(h, 0.0)                                           # (1, 128)

    # ---- 1-layer tanh RNN, fully unrolled (SEQ is a compile-time constant) ----
    w_hh = wblk(ROW_HH)                                               # resident across steps
    for t in range(S):
        h = jnp.tanh(xw[t:t + 1, :]
                     + jnp.dot(h, w_hh, preferred_element_type=f32))
        hseq_ref[t:t + 1, :] = h                                      # static-indexed store
    hfin_ref[...] = h                                                 # (1, 128) final hidden

    # ---- fc + per-batch-element softmax, written lane-dense as (S, B*O) = (8, 128) ----
    logits = jnp.dot(hseq_ref[...], wblk(ROW_FC), preferred_element_type=f32) + brow(2)
    m = jnp.max(logits, axis=-1, keepdims=True)   # shared row max (softmax is shift-invariant)
    e = jnp.exp(logits - m)
    den = jnp.dot(e, wblk(ROW_SEG), preferred_element_type=f32)       # per-segment sums
    probs_full = e * pl.reciprocal(den, approx=True)
    probs_ref[...] = probs_full[:, :B * O]                            # full (8, 128) store


def _pack_params(params):
    """Pack all weights into one (768,128) slab and all biases into one (8,128) slab."""
    f32 = jnp.float32

    def bdiag(w):                       # block-diagonal over the batch
        return jax.scipy.linalg.block_diag(*([w.astype(f32)] * BATCH))

    def pad_tile(w):                    # zero-pad to a full (128, 128) tile
        r, c = w.shape
        return jnp.pad(w, ((0, LANES - r), (0, LANES - c)))

    seg_ids = np.arange(BATCH * OUTPUT_DIM) // OUTPUT_DIM             # host-side constant
    seg = jnp.asarray((seg_ids[:, None] == seg_ids[None, :]).astype(np.float32))

    blocks = [
        bdiag(params["emb"]),           # (B*V, B*D)   embedding table
        bdiag(params["w_lt"].T),        # (B*L, B*H)   latent->hidden Linear
        bdiag(params["w_ih"].T),        # (B*D, B*H)   RNN W_ih^T
        bdiag(params["w_hh"].T),        # (B*H, B*H)   RNN W_hh^T
        bdiag(params["w_fc"].T),        # (B*H, B*O)   fc
        seg,                            # (B*O, B*O)   softmax segment mask
    ]
    wslab = jnp.concatenate([pad_tile(b) for b in blocks], axis=0)    # (768, 128)

    def bias_row(v):
        v = jnp.tile(v.astype(f32), BATCH)
        return jnp.pad(v, (0, LANES - v.shape[0]))

    bslab = jnp.zeros((8, LANES), f32)
    bslab = bslab.at[0].set(bias_row(params["b_lt"]))
    bslab = bslab.at[1].set(bias_row(params["b_ih"] + params["b_hh"]))   # pre-summed on host
    bslab = bslab.at[2].set(bias_row(params["b_fc"]))
    return wslab, bslab


def vae_decoder_forward(tokens, hidden, params):
    """tokens: (B, S) int32, hidden: (NUM_LAYERS, B, LATENT_DIM) f32 (PyTorch batch-first)."""
    B, S = tokens.shape
    assert (B, S) == (BATCH, SEQ)

    tokens_t = jnp.transpose(tokens, (1, 0)).astype(jnp.int32)        # (S, B) time-major
    h0 = hidden.reshape(1, B * LATENT_DIM).astype(jnp.float32)        # batch packed along lanes
    h0 = jnp.pad(h0, ((0, 0), (0, LANES - B * LATENT_DIM)))           # (1, 128)
    wslab, bslab = _pack_params(params)

    inputs = (tokens_t, h0, wslab, bslab)

    def full_spec(a):
        nd = a.ndim
        return pl.BlockSpec(a.shape, lambda i, _nd=nd: (0,) * _nd)

    out_shapes = (
        jax.ShapeDtypeStruct((S, B * OUTPUT_DIM), jnp.float32),       # lane-dense probs
        jax.ShapeDtypeStruct((1, LANES), jnp.float32),                # padded final hidden
    )
    out_specs = (
        pl.BlockSpec((S, B * OUTPUT_DIM), lambda i: (0, 0)),
        pl.BlockSpec((1, LANES), lambda i: (0, 0)),
    )

    probs_sl, hfin = pl.pallas_call(
        vae_decoder_kernel,
        out_shape=out_shapes,
        grid=(1,),
        in_specs=[full_spec(a) for a in inputs],
        out_specs=out_specs,
        scratch_shapes=[pltpu.VMEM((S, LANES), jnp.float32)],         # RNN hidden sequence
        compiler_params=pltpu.CompilerParams(dimension_semantics=("arbitrary",)),
    )(*inputs)

    probs = probs_sl.reshape(S, B, OUTPUT_DIM).transpose(1, 0, 2)     # (B, S, O) batch-first
    h_out = hfin[:, :B * HIDDEN_DIM].reshape(NUM_LAYERS, B, HIDDEN_DIM)
    return probs, h_out


def init_params(key):
    ks = jax.random.split(key, 9)

    def u(k, shape, fan_in):
        bound = 1.0 / np.sqrt(fan_in)
        return jax.random.uniform(k, shape, jnp.float32, -bound, bound)

    # PyTorch-shaped parameters (Linear/RNN weights are (out, in)).
    return {
        "emb":  jax.random.normal(ks[0], (WORD_COUNT, D_MODEL), jnp.float32),
        "w_lt": u(ks[1], (HIDDEN_DIM, LATENT_DIM), LATENT_DIM),   # forward-time Linear(latent, hidden)
        "b_lt": u(ks[2], (HIDDEN_DIM,), LATENT_DIM),
        "w_ih": u(ks[3], (HIDDEN_DIM, D_MODEL), HIDDEN_DIM),      # RNN weight_ih_l0
        "w_hh": u(ks[4], (HIDDEN_DIM, HIDDEN_DIM), HIDDEN_DIM),   # RNN weight_hh_l0
        "b_ih": u(ks[5], (HIDDEN_DIM,), HIDDEN_DIM),
        "b_hh": u(ks[6], (HIDDEN_DIM,), HIDDEN_DIM),
        "w_fc": u(ks[7], (OUTPUT_DIM, HIDDEN_DIM), HIDDEN_DIM),   # fc
        "b_fc": u(ks[8], (OUTPUT_DIM,), HIDDEN_DIM),
    }


def reference_forward(tokens, hidden, params):
    """Pure-JAX reference matching the PyTorch forward semantics."""
    emb = params["emb"][tokens]                                             # (B, S, D)
    h = jax.nn.relu(hidden[0] @ params["w_lt"].T + params["b_lt"])          # linear_transform
    hs = []
    for t in range(tokens.shape[1]):
        h = jnp.tanh(emb[:, t] @ params["w_ih"].T + params["b_ih"]
                     + h @ params["w_hh"].T + params["b_hh"])
        hs.append(h)
    hseq = jnp.stack(hs, axis=1)                                            # (B, S, H)
    logits = hseq @ params["w_fc"].T + params["b_fc"]                       # (B, S, O)
    probs = jax.nn.softmax(logits, axis=2)
    return probs, h[None]


if __name__ == "__main__":
    key = jax.random.PRNGKey(0)
    kp, kt, kh = jax.random.split(key, 3)

    params = init_params(kp)
    tokens = jax.random.randint(kt, (BATCH, SEQ), 0, WORD_COUNT, dtype=jnp.int32)
    hidden = jax.random.normal(kh, (NUM_LAYERS, BATCH, LATENT_DIM), jnp.float32)

    fwd = jax.jit(functools.partial(vae_decoder_forward, params=params))
    probs, h_out = fwd(tokens, hidden)
    jax.block_until_ready((probs, h_out))

    assert probs.shape == (BATCH, SEQ, OUTPUT_DIM)
    assert h_out.shape == (NUM_LAYERS, BATCH, HIDDEN_DIM)

    ref_probs, ref_h = reference_forward(tokens, hidden, params)
    np.testing.assert_allclose(np.asarray(probs), np.asarray(ref_probs), rtol=1e-3, atol=1e-3)
    np.testing.assert_allclose(np.asarray(h_out), np.asarray(ref_h), rtol=1e-3, atol=1e-3)

    print("KERNEL_OK")
</pallas_src>

<mosaic_0001>
module attributes {stable_mosaic.version = 11 : i64} {
  func.func @vae_decoder_kernel(%arg0: i32, %arg1: memref<8x2xi32, #tpu.memory_space<vmem>>, %arg2: memref<1x128xf32, #tpu.memory_space<vmem>>, %arg3: memref<768x128xf32, #tpu.memory_space<vmem>>, %arg4: memref<8x128xf32, #tpu.memory_space<vmem>>, %arg5: memref<8x128xf32, #tpu.memory_space<vmem>>, %arg6: memref<1x128xf32, #tpu.memory_space<vmem>>, %arg7: memref<8x128xf32, #tpu.memory_space<vmem>>) attributes {dimension_semantics = [#tpu.dimension_semantics<arbitrary>], iteration_bounds = array<i64: 1>, scalar_prefetch = 0 : i64, scratch_operands = 1 : i64, tpu.core_type = #tpu.core_type<tc>, window_params = [{pipeline_mode = #tpu.pipeline_mode<synchronous>, transform_indices = @transform_0, window_bounds = array<i64: 8, 2>}, {pipeline_mode = #tpu.pipeline_mode<synchronous>, transform_indices = @transform_1, window_bounds = array<i64: 1, 128>}, {pipeline_mode = #tpu.pipeline_mode<synchronous>, transform_indices = @transform_2, window_bounds = array<i64: 768, 128>}, {pipeline_mode = #tpu.pipeline_mode<synchronous>, transform_indices = @transform_3, window_bounds = array<i64: 8, 128>}, {pipeline_mode = #tpu.pipeline_mode<synchronous>, transform_indices = @transform_4, window_bounds = array<i64: 8, 128>}, {pipeline_mode = #tpu.pipeline_mode<synchronous>, transform_indices = @transform_5, window_bounds = array<i64: 1, 128>}]} {
    %0 = tpu.iota {dimensions = array<i32: 1>} : vector<8x128xi32>
    %c0 = arith.constant 0 : index
    %c0_0 = arith.constant 0 : index
    %1 = vector.load %arg1[%c0, %c0_0] : memref<8x2xi32, #tpu.memory_space<vmem>>, vector<8x1xi32>
    %2 = vector.shape_cast %1 : vector<8x1xi32> to vector<8x1xi32>
    %3 = vector.broadcast %2 : vector<8x1xi32> to vector<8x128xi32>
    %c64_i32 = arith.constant 64 : i32
    %4 = vector.broadcast %c64_i32 : i32 to vector<8x128xi32>
    %5 = arith.cmpi sge, %0, %4 : vector<8x128xi32>
    %c0_1 = arith.constant 0 : index
    %c1 = arith.constant 1 : index
    %6 = vector.load %arg1[%c0_1, %c1] : memref<8x2xi32, #tpu.memory_space<vmem>>, vector<8x1xi32>
    %c64_i32_2 = arith.constant 64 : i32
    %7 = vector.broadcast %c64_i32_2 : i32 to vector<8x1xi32>
    %8 = arith.addi %6, %7 : vector<8x1xi32>
    %9 = vector.shape_cast %8 : vector<8x1xi32> to vector<8x1xi32>
    %10 = vector.broadcast %9 : vector<8x1xi32> to vector<8x128xi32>
    %11 = arith.select %5, %10, %3 : vector<8x128xi1>, vector<8x128xi32>
    %12 = arith.cmpi eq, %11, %0 : vector<8x128xi32>
    %13 = arith.extui %12 : vector<8x128xi1> to vector<8x128xi32>
    %14 = arith.sitofp %13 : vector<8x128xi32> to vector<8x128xf32>
    %c0_3 = arith.constant 0 : index
    %c0_4 = arith.constant 0 : index
    %15 = vector.load %arg3[%c0_3, %c0_4] : memref<768x128xf32, #tpu.memory_space<vmem>>, vector<128x128xf32>
    %cst = arith.constant dense<0.000000e+00> : vector<8x128xf32>
    %16 = tpu.matmul %14, %15, %cst {dimension_numbers = #tpu.dot_dimension_numbers<[1], [0], [0], [1], [0, 0, 1, 1], [], []>} : vector<8x128xf32>, vector<128x128xf32>, vector<8x128xf32> -> vector<8x128xf32>
    %c256 = arith.constant 256 : index
    %c0_5 = arith.constant 0 : index
    %17 = vector.load %arg3[%c256, %c0_5] : memref<768x128xf32, #tpu.memory_space<vmem>>, vector<128x128xf32>
    %cst_6 = arith.constant dense<0.000000e+00> : vector<8x128xf32>
    %18 = tpu.matmul %16, %17, %cst_6 {dimension_numbers = #tpu.dot_dimension_numbers<[1], [0], [0], [1], [0, 0, 1, 1], [], []>} : vector<8x128xf32>, vector<128x128xf32>, vector<8x128xf32> -> vector<8x128xf32>
    %c1_7 = arith.constant 1 : index
    %c0_8 = arith.constant 0 : index
    %19 = vector.load %arg4[%c1_7, %c0_8] : memref<8x128xf32, #tpu.memory_space<vmem>>, vector<1x128xf32>
    %20 = vector.broadcast %19 : vector<1x128xf32> to vector<8x128xf32>
    %21 = arith.addf %18, %20 : vector<8x128xf32>
    %c0_9 = arith.constant 0 : index
    %c0_10 = arith.constant 0 : index
    %22 = vector.load %arg2[%c0_9, %c0_10] : memref<1x128xf32, #tpu.memory_space<vmem>>, vector<1x128xf32>
    %c128 = arith.constant 128 : index
    %c0_11 = arith.constant 0 : index
    %23 = vector.load %arg3[%c128, %c0_11] : memref<768x128xf32, #tpu.memory_space<vmem>>, vector<128x128xf32>
    %cst_12 = arith.constant dense<0.000000e+00> : vector<1x128xf32>
    %24 = tpu.matmul %22, %23, %cst_12 {dimension_numbers = #tpu.dot_dimension_numbers<[1], [0], [0], [1], [0, 0, 1, 1], [], []>} : vector<1x128xf32>, vector<128x128xf32>, vector<1x128xf32> -> vector<1x128xf32>
    %c0_13 = arith.constant 0 : index
    %c0_14 = arith.constant 0 : index
    %25 = vector.load %arg4[%c0_13, %c0_14] : memref<8x128xf32, #tpu.memory_space<vmem>>, vector<1x128xf32>
    %26 = arith.addf %24, %25 : vector<1x128xf32>
    %cst_15 = arith.constant 0.000000e+00 : f32
    %27 = vector.broadcast %cst_15 : f32 to vector<1x128xf32>
    %28 = arith.maximumf %26, %27 : vector<1x128xf32>
    %c384 = arith.constant 384 : index
    %c0_16 = arith.constant 0 : index
    %29 = vector.load %arg3[%c384, %c0_16] : memref<768x128xf32, #tpu.memory_space<vmem>>, vector<128x128xf32>
    %30 = vector.extract_strided_slice %21 {offsets = [0, 0], sizes = [1, 128], strides = [1, 1]} : vector<8x128xf32> to vector<1x128xf32>
    %cst_17 = arith.constant dense<0.000000e+00> : vector<1x128xf32>
    %31 = tpu.matmul %28, %29, %cst_17 {dimension_numbers = #tpu.dot_dimension_numbers<[1], [0], [0], [1], [0, 0, 1, 1], [], []>} : vector<1x128xf32>, vector<128x128xf32>, vector<1x128xf32> -> vector<1x128xf32>
    %32 = arith.addf %30, %31 : vector<1x128xf32>
    %33 = math.tanh %32 : vector<1x128xf32>
    %c0_18 = arith.constant 0 : index
    %c0_19 = arith.constant 0 : index
    %34 = vector.load %arg7[%c0_18, %c0_19] : memref<8x128xf32, #tpu.memory_space<vmem>>, vector<1x128xf32>
    tpu.vector_store %arg7[%c0_18, %c0_19], %33 {strides = array<i32>} : memref<8x128xf32, #tpu.memory_space<vmem>>, vector<1x128xf32>,
    %35 = vector.extract_strided_slice %21 {offsets = [1, 0], sizes = [1, 128], strides = [1, 1]} : vector<8x128xf32> to vector<1x128xf32>
    %cst_20 = arith.constant dense<0.000000e+00> : vector<1x128xf32>
    %36 = tpu.matmul %33, %29, %cst_20 {dimension_numbers = #tpu.dot_dimension_numbers<[1], [0], [0], [1], [0, 0, 1, 1], [], []>} : vector<1x128xf32>, vector<128x128xf32>, vector<1x128xf32> -> vector<1x128xf32>
    %37 = arith.addf %35, %36 : vector<1x128xf32>
    %38 = math.tanh %37 : vector<1x128xf32>
    %c1_21 = arith.constant 1 : index
    %c0_22 = arith.constant 0 : index
    %39 = vector.load %arg7[%c1_21, %c0_22] : memref<8x128xf32, #tpu.memory_space<vmem>>, vector<1x128xf32>
    tpu.vector_store %arg7[%c1_21, %c0_22], %38 {strides = array<i32>} : memref<8x128xf32, #tpu.memory_space<vmem>>, vector<1x128xf32>,
    %40 = vector.extract_strided_slice %21 {offsets = [2, 0], sizes = [1, 128], strides = [1, 1]} : vector<8x128xf32> to vector<1x128xf32>
    %cst_23 = arith.constant dense<0.000000e+00> : vector<1x128xf32>
    %41 = tpu.matmul %38, %29, %cst_23 {dimension_numbers = #tpu.dot_dimension_numbers<[1], [0], [0], [1], [0, 0, 1, 1], [], []>} : vector<1x128xf32>, vector<128x128xf32>, vector<1x128xf32> -> vector<1x128xf32>
    %42 = arith.addf %40, %41 : vector<1x128xf32>
    %43 = math.tanh %42 : vector<1x128xf32>
    %c2 = arith.constant 2 : index
    %c0_24 = arith.constant 0 : index
    %44 = vector.load %arg7[%c2, %c0_24] : memref<8x128xf32, #tpu.memory_space<vmem>>, vector<1x128xf32>
    tpu.vector_store %arg7[%c2, %c0_24], %43 {strides = array<i32>} : memref<8x128xf32, #tpu.memory_space<vmem>>, vector<1x128xf32>,
    %45 = vector.extract_strided_slice %21 {offsets = [3, 0], sizes = [1, 128], strides = [1, 1]} : vector<8x128xf32> to vector<1x128xf32>
    %cst_25 = arith.constant dense<0.000000e+00> : vector<1x128xf32>
    %46 = tpu.matmul %43, %29, %cst_25 {dimension_numbers = #tpu.dot_dimension_numbers<[1], [0], [0], [1], [0, 0, 1, 1], [], []>} : vector<1x128xf32>, vector<128x128xf32>, vector<1x128xf32> -> vector<1x128xf32>
    %47 = arith.addf %45, %46 : vector<1x128xf32>
    %48 = math.tanh %47 : vector<1x128xf32>
    %c3 = arith.constant 3 : index
    %c0_26 = arith.constant 0 : index
    %49 = vector.load %arg7[%c3, %c0_26] : memref<8x128xf32, #tpu.memory_space<vmem>>, vector<1x128xf32>
    tpu.vector_store %arg7[%c3, %c0_26], %48 {strides = array<i32>} : memref<8x128xf32, #tpu.memory_space<vmem>>, vector<1x128xf32>,
    %50 = vector.extract_strided_slice %21 {offsets = [4, 0], sizes = [1, 128], strides = [1, 1]} : vector<8x128xf32> to vector<1x128xf32>
    %cst_27 = arith.constant dense<0.000000e+00> : vector<1x128xf32>
    %51 = tpu.matmul %48, %29, %cst_27 {dimension_numbers = #tpu.dot_dimension_numbers<[1], [0], [0], [1], [0, 0, 1, 1], [], []>} : vector<1x128xf32>, vector<128x128xf32>, vector<1x128xf32> -> vector<1x128xf32>
    %52 = arith.addf %50, %51 : vector<1x128xf32>
    %53 = math.tanh %52 : vector<1x128xf32>
    %c4 = arith.constant 4 : index
    %c0_28 = arith.constant 0 : index
    %54 = vector.load %arg7[%c4, %c0_28] : memref<8x128xf32, #tpu.memory_space<vmem>>, vector<1x128xf32>
    tpu.vector_store %arg7[%c4, %c0_28], %53 {strides = array<i32>} : memref<8x128xf32, #tpu.memory_space<vmem>>, vector<1x128xf32>,
    %55 = vector.extract_strided_slice %21 {offsets = [5, 0], sizes = [1, 128], strides = [1, 1]} : vector<8x128xf32> to vector<1x128xf32>
    %cst_29 = arith.constant dense<0.000000e+00> : vector<1x128xf32>
    %56 = tpu.matmul %53, %29, %cst_29 {dimension_numbers = #tpu.dot_dimension_numbers<[1], [0], [0], [1], [0, 0, 1, 1], [], []>} : vector<1x128xf32>, vector<128x128xf32>, vector<1x128xf32> -> vector<1x128xf32>
    %57 = arith.addf %55, %56 : vector<1x128xf32>
    %58 = math.tanh %57 : vector<1x128xf32>
    %c5 = arith.constant 5 : index
    %c0_30 = arith.constant 0 : index
    %59 = vector.load %arg7[%c5, %c0_30] : memref<8x128xf32, #tpu.memory_space<vmem>>, vector<1x128xf32>
    tpu.vector_store %arg7[%c5, %c0_30], %58 {strides = array<i32>} : memref<8x128xf32, #tpu.memory_space<vmem>>, vector<1x128xf32>,
    %60 = vector.extract_strided_slice %21 {offsets = [6, 0], sizes = [1, 128], strides = [1, 1]} : vector<8x128xf32> to vector<1x128xf32>
    %cst_31 = arith.constant dense<0.000000e+00> : vector<1x128xf32>
    %61 = tpu.matmul %58, %29, %cst_31 {dimension_numbers = #tpu.dot_dimension_numbers<[1], [0], [0], [1], [0, 0, 1, 1], [], []>} : vector<1x128xf32>, vector<128x128xf32>, vector<1x128xf32> -> vector<1x128xf32>
    %62 = arith.addf %60, %61 : vector<1x128xf32>
    %63 = math.tanh %62 : vector<1x128xf32>
    %c6 = arith.constant 6 : index
    %c0_32 = arith.constant 0 : index
    %64 = vector.load %arg7[%c6, %c0_32] : memref<8x128xf32, #tpu.memory_space<vmem>>, vector<1x128xf32>
    tpu.vector_store %arg7[%c6, %c0_32], %63 {strides = array<i32>} : memref<8x128xf32, #tpu.memory_space<vmem>>, vector<1x128xf32>,
    %65 = vector.extract_strided_slice %21 {offsets = [7, 0], sizes = [1, 128], strides = [1, 1]} : vector<8x128xf32> to vector<1x128xf32>
    %cst_33 = arith.constant dense<0.000000e+00> : vector<1x128xf32>
    %66 = tpu.matmul %63, %29, %cst_33 {dimension_numbers = #tpu.dot_dimension_numbers<[1], [0], [0], [1], [0, 0, 1, 1], [], []>} : vector<1x128xf32>, vector<128x128xf32>, vector<1x128xf32> -> vector<1x128xf32>
    %67 = arith.addf %65, %66 : vector<1x128xf32>
    %68 = math.tanh %67 : vector<1x128xf32>
    %c7 = arith.constant 7 : index
    %c0_34 = arith.constant 0 : index
    %69 = vector.load %arg7[%c7, %c0_34] : memref<8x128xf32, #tpu.memory_space<vmem>>, vector<1x128xf32>
    tpu.vector_store %arg7[%c7, %c0_34], %68 {strides = array<i32>} : memref<8x128xf32, #tpu.memory_space<vmem>>, vector<1x128xf32>,
    %c0_35 = arith.constant 0 : index
    %c0_36 = arith.constant 0 : index
    %70 = vector.load %arg6[%c0_35, %c0_36] : memref<1x128xf32, #tpu.memory_space<vmem>>, vector<1x128xf32>
    tpu.vector_store %arg6[%c0_35, %c0_36], %68 {strides = array<i32>} : memref<1x128xf32, #tpu.memory_space<vmem>>, vector<1x128xf32>,
    %c0_37 = arith.constant 0 : index
    %c0_38 = arith.constant 0 : index
    %71 = vector.load %arg7[%c0_37, %c0_38] : memref<8x128xf32, #tpu.memory_space<vmem>>, vector<8x128xf32>
    %c512 = arith.constant 512 : index
    %c0_39 = arith.constant 0 : index
    %72 = vector.load %arg3[%c512, %c0_39] : memref<768x128xf32, #tpu.memory_space<vmem>>, vector<128x128xf32>
    %cst_40 = arith.constant dense<0.000000e+00> : vector<8x128xf32>
    %73 = tpu.matmul %71, %72, %cst_40 {dimension_numbers = #tpu.dot_dimension_numbers<[1], [0], [0], [1], [0, 0, 1, 1], [], []>} : vector<8x128xf32>, vector<128x128xf32>, vector<8x128xf32> -> vector<8x128xf32>
    %c2_41 = arith.constant 2 : index
    %c0_42 = arith.constant 0 : index
    %74 = vector.load %arg4[%c2_41, %c0_42] : memref<8x128xf32, #tpu.memory_space<vmem>>, vector<1x128xf32>
    %75 = vector.broadcast %74 : vector<1x128xf32> to vector<8x128xf32>
    %76 = arith.addf %73, %75 : vector<8x128xf32>
    %cst_43 = arith.constant dense<0xFF800000> : vector<8xf32>
    %77 = vector.multi_reduction <maximumf>, %76, %cst_43 [1] : vector<8x128xf32> to vector<8xf32>
    %78 = vector.shape_cast %77 : vector<8xf32> to vector<8x1xf32>
    %79 = vector.broadcast %78 : vector<8x1xf32> to vector<8x128xf32>
    %80 = arith.subf %76, %79 : vector<8x128xf32>
    %81 = math.exp %80 : vector<8x128xf32>
    %c640 = arith.constant 640 : index
    %c0_44 = arith.constant 0 : index
    %82 = vector.load %arg3[%c640, %c0_44] : memref<768x128xf32, #tpu.memory_space<vmem>>, vector<128x128xf32>
    %cst_45 = arith.constant dense<0.000000e+00> : vector<8x128xf32>
    %83 = tpu.matmul %81, %82, %cst_45 {dimension_numbers = #tpu.dot_dimension_numbers<[1], [0], [0], [1], [0, 0, 1, 1], [], []>} : vector<8x128xf32>, vector<128x128xf32>, vector<8x128xf32> -> vector<8x128xf32>
    %84 = tpu.reciprocal %83 {approx = true} : vector<8x128xf32> -> vector<8x128xf32>
    %85 = arith.mulf %81, %84 : vector<8x128xf32>
    %c0_46 = arith.constant 0 : index
    %c0_47 = arith.constant 0 : index
    %86 = vector.load %arg5[%c0_46, %c0_47] : memref<8x128xf32, #tpu.memory_space<vmem>>, vector<8x128xf32>
    tpu.vector_store %arg5[%c0_46, %c0_47], %85 {strides = array<i32>} : memref<8x128xf32, #tpu.memory_space<vmem>>, vector<8x128xf32>,
    return
  }
  func.func @transform_0(%arg0: i32) -> (i32, i32) {
    %c0_i32 = arith.constant 0 : i32
    %c0_i32_0 = arith.constant 0 : i32
    %c0_i32_1 = arith.constant 0 : i32
    return %c0_i32, %c0_i32_0 : i32, i32
  }
  func.func @transform_1(%arg0: i32) -> (i32, i32) {
    %c0_i32 = arith.constant 0 : i32
    %c0_i32_0 = arith.constant 0 : i32
    %c0_i32_1 = arith.constant 0 : i32
    return %c0_i32, %c0_i32_0 : i32, i32
  }
  func.func @transform_2(%arg0: i32) -> (i32, i32) {
    %c0_i32 = arith.constant 0 : i32
    %c0_i32_0 = arith.constant 0 : i32
    %c0_i32_1 = arith.constant 0 : i32
    return %c0_i32, %c0_i32_0 : i32, i32
  }
  func.func @transform_3(%arg0: i32) -> (i32, i32) {
    %c0_i32 = arith.constant 0 : i32
    %c0_i32_0 = arith.constant 0 : i32
    %c0_i32_1 = arith.constant 0 : i32
    return %c0_i32, %c0_i32_0 : i32, i32
  }
  func.func @transform_4(%arg0: i32) -> (i32, i32) {
    %c0_i32 = arith.constant 0 : i32
    %c0_i32_0 = arith.constant 0 : i32
    %c0_i32_1 = arith.constant 0 : i32
    return %c0_i32, %c0_i32_0 : i32, i32
  }
  func.func @transform_5(%arg0: i32) -> (i32, i32) {
    %c0_i32 = arith.constant 0 : i32
    %c0_i32_0 = arith.constant 0 : i32
    %c0_i32_1 = arith.constant 0 : i32
    return %c0_i32, %c0_i32_0 : i32, i32
  }
}

</mosaic_0001>

<bundles_post_ra>
// kernel: tile.14
= control target key start
LH: loop header
LB: loop body
LE: loop exit
PB: predicated region body
PF: predicated region fallthrough
CT: control target
= control target key end

     0   :  { %s22_s0 = inlined_call_operand.vmem [shape: f32[32], index: 0, kind: input, shape index: {}]   ;;  %s23_s1 = inlined_call_operand.vmem [shape: f32[2,32], index: 1, kind: output, shape index: {}]  }
   0x1   :  { %v4_v0 = vld [vmem:[%s22_s0] ss:$0 sm:$0xff] }
   0x2   :  { %5 = vst [vmem:[%s23_s1] sm:$0x3] %v4_v0 }

// kernel: tile.15
= control target key start
LH: loop header
LB: loop body
LE: loop exit
PB: predicated region body
PF: predicated region fallthrough
CT: control target
= control target key end

     0   :  { %vm7_vm0 = vcmask 261120   ;;  %vm13_vm1 = vcmask 523520   ;;  %s39_s0 = inlined_call_operand.vmem [shape: f32[2,32], index: 0, kind: input, shape index: {}]   ;;  %s40_s1 = inlined_call_operand.vmem [shape: f32[64], index: 1, kind: output, shape index: {}]  }
   0x1   :  { %v4_v0 = vld [vmem:[%s39_s0] sm:$0x3]  ;;  %s22_s0 = smov 32  }
   0x2   :  { %5 = vst [vmem:[#allocation1] sm:$0x3] %v4_v0 }
   0x9   :  { %v10_v1 = vld [vmem:[#allocation1 + $0x1] sm:$0x1]   ;;  %v6_v2 = vld [vmem:[#allocation1] sm:$0x1]  }
   0xa   :  { %11 = vrot.lane.b32.xlu0 %v10_v1, %s22_s0  ;;  %8 = vst.msk [vmem:[#allocation0] sm:$0x1] %vm7_vm0, %v6_v2  }
  0x7c   :  { %v12_v3 = vpop.permute.xlu0 %11  }
  0x7d   :  { %14 = vst.msk [vmem:[#allocation0] sm:$0x1] %vm13_vm1, %v12_v3  }
  0x84   :  { %v18_v4 = vld [vmem:[#allocation0] sm:$0x1] }
  0x85   :  { %20 = vst [vmem:[%s40_s1] sm:$0x1] %v18_v4 }

// kernel: tile.22
= control target key start
LH: loop header
LB: loop body
LE: loop exit
PB: predicated region body
PF: predicated region fallthrough
CT: control target
= control target key end

     0   :  { %s22_s0 = inlined_call_operand.vmem [shape: f32[64], index: 0, kind: input, shape index: {}]   ;;  %s23_s1 = inlined_call_operand.vmem [shape: f32[2,64], index: 1, kind: output, shape index: {}]  }
   0x1   :  { %v4_v0 = vld [vmem:[%s22_s0] ss:$0 sm:$0xff] }
   0x2   :  { %5 = vst [vmem:[%s23_s1] sm:$0x3] %v4_v0 }

// kernel: vae_decoder_forward.1
= control target key start
LH: loop header
LB: loop body
LE: loop exit
PB: predicated region body
PF: predicated region fallthrough
CT: control target
= control target key end

     0   :  { %11 = vsyncpa [#allocation4], 0  ;;  %s2196_s18 = smov [#allocation3]   ;;  %s2488_s0 = inlined_call_operand.vmem [shape: s32[8,2], index: 0, kind: input, shape index: {}]   ;;  %s2489_s1 = inlined_call_operand.vmem [shape: f32[1,128], index: 1, kind: input, shape index: {}]   ;;  %s2490_s2 = inlined_call_operand.hbm [shape: f32[768,128], index: 2, kind: input, shape index: {}]   ;;  %s2491_s3 = inlined_call_operand.vmem [shape: f32[8,128], index: 3, kind: input, shape index: {}]   ;;  %s2492_s4 = inlined_call_operand.vmem [shape: f32[8,128], index: 4, kind: output, shape index: {0}]   ;;  %s2493_s5 = inlined_call_operand.vmem [shape: f32[1,128], index: 5, kind: output, shape index: {1}]  }
   0x1   :  { %s21_s19 = sshll.u32 %s2196_s18, 4  ;;  %s2172_s22 = scalar_lea.hbm %s2490_s2, 12288  ;;  %s22_s19 = int_to_ptr.vmem [resolvable:$true] %s21_s19 }
   0x2   :  { %p2173_p0 = scmp.ne.s32.totalorder %s2490_s2, %s2172_s22  ;;  %p2176_p1 = scmp.lt.u32.totalorder %s2172_s22, %s2490_s2 }
   0x4   :  { %p2178_p2 = pnand %p2176_p1, %p2173_p0 }
   0x6   :  { %2181 = shalt.err (!%p2178_p2)
}
   0x7   :  { %s2182_s27 = scalar_lea.vmem %s22_s19, 12288  ;;  %p2187_p4 = scmp.lt.s32.totalorder %s22_s19, %s22_s19 }
   0x8   :  { %p2183_p3 = scmp.ne.s32.totalorder %s22_s19, %s2182_s27  ;;  %p2188_p5 = scmp.lt.s32.totalorder %s2182_s27, %s2182_s27 }
   0xa   :  { %p2189_p6 = por %p2188_p5, %p2187_p4 }
   0xc   :  { %p2190_p7 = pnand %p2189_p6, %p2183_p3 }
   0xe   :  { %2193 = shalt.err (!%p2190_p7)
}
   0xf   :  { %s2197_s28 = smov 128   ;;  %s2198_s29 = smov 8  }
  0x10   :  { %27 = dma.hbm_to_vmem [thread:$0]  %s2490_s2, 12288, %s22_s19, [#allocation4], %s2197_s28, %s2197_s28, %s2198_s29  }
  0x11   :  { %2194 = dma.done.wait [#allocation4], 12288  }
  0x12   :  { %2195 = vsyncadd [#allocation4], 4294955008  ;;  %v2199_v0 = vmov 0   ;;  %v2200_v1 = vmov 0.0|0.0   ;;  %v35_v2 = vld [vmem:[%s2488_s0] sm:$0xff]  ;;  %v48_v3 = vld [vmem:[#allocation3] sm:$0xff]  ;;  %v33_v54 = vlaneseq }
  0x13   :  { %2150 = vset.pattern.permute.xlu0 %v2199_v0  ;;  %1829 = vmatprep.subr.bf16.mxu0 %v2200_v1  ;;  %v49_v4 = vld [vmem:[#allocation3 + $0x8] sm:$0xff]  ;;  %v50_v6 = vld [vmem:[#allocation3 + $0x10] sm:$0xff]  ;;  %v51_v7 = vld [vmem:[#allocation3 + $0x18] sm:$0xff]  ;;  %v40_v8 = vadd.s32 64, %v35_v2  ;;  %v2201_v12 = vmov 1   ;;  %vm2202_vm0 = vmmov 0  }
  0x14   :  { %1853 = vmatprep.subr.bf16.mxu1 %v2200_v1  ;;  %37 = vperm.xlu0 %2150, %v35_v2   ;;  %v1830_v5 = vpack.c.bf16 %v49_v4, %v48_v3  ;;  %v1833_v9 = vpack.c.bf16 %v51_v7, %v50_v6  ;;  %v52_v10 = vld [vmem:[#allocation3 + $0x20] sm:$0xff]  ;;  %v53_v11 = vld [vmem:[#allocation3 + $0x28] sm:$0xff]  ;;  %v2203_v14 = vmov 0.0   ;;  %v54_v15 = vld [vmem:[#allocation3 + $0x30] sm:$0xff]  ;;  %v34_v55 = vand.u32 127, %v33_v54 }
  0x15   :  { %v1836_v13 = vpack.c.bf16 %v53_v11, %v52_v10  ;;  %1406 = vmatprep.mubr.msk.f32.mxu0 %vm2202_vm0, %v2203_v14  ;;  %v55_v16 = vld [vmem:[#allocation3 + $0x38] sm:$0xff]  ;;  %1441 = vmatprep.mubr.msk.f32.mxu1 %vm2202_vm0, %v2203_v14  ;;  %v56_v18 = vld [vmem:[#allocation3 + $0x40] sm:$0xff]  ;;  %v57_v19 = vld [vmem:[#allocation3 + $0x48] sm:$0xff]  ;;  %v2204_v0 = vmov 1.0  }
  0x16   :  { %1831 = vmatpush3.bf16.msra.mxu0 %v1830_v5  ;;  %v1839_v17 = vpack.c.bf16 %v55_v16, %v54_v15  ;;  %v1842_v20 = vpack.c.bf16 %v57_v19, %v56_v18  ;;  %v58_v21 = vld [vmem:[#allocation3 + $0x50] sm:$0xff]  ;;  %v59_v22 = vld [vmem:[#allocation3 + $0x58] sm:$0xff]  ;;  %v60_v24 = vld [vmem:[#allocation3 + $0x60] sm:$0xff]  ;;  %vm39_vm1 = vcmp.ge.s32.totalorder %v34_v55, 64 }
  0x17   :  { %1832 = vmatprep.subr.bf16.mxu0 %v2200_v1  ;;  %v1845_v23 = vpack.c.bf16 %v59_v22, %v58_v21  ;;  %v61_v25 = vld [vmem:[#allocation3 + $0x68] sm:$0xff]  ;;  %v62_v27 = vld [vmem:[#allocation3 + $0x70] sm:$0xff]  ;;  %v63_v28 = vld [vmem:[#allocation3 + $0x78] sm:$0xff] }
  0x18   :  { %2151 = vset.pattern.permute.xlu0 %v2201_v12  ;;  %v1848_v26 = vpack.c.bf16 %v61_v25, %v60_v24  ;;  %v1851_v29 = vpack.c.bf16 %v63_v28, %v62_v27  ;;  %v134_v30 = vld [vmem:[#allocation3 + $0x100] sm:$0xff]  ;;  %v135_v31 = vld [vmem:[#allocation3 + $0x108] sm:$0xff]  ;;  %v136_v32 = vld [vmem:[#allocation3 + $0x110] sm:$0xff] }
  0x19   :  { %42 = vperm.xlu0 %2151, %v40_v8   ;;  %v1854_v33 = vpack.c.bf16 %v135_v31, %v134_v30  ;;  %v137_v34 = vld [vmem:[#allocation3 + $0x118] sm:$0xff]  ;;  %v138_v36 = vld [vmem:[#allocation3 + $0x120] sm:$0xff]  ;;  %v139_v37 = vld [vmem:[#allocation3 + $0x128] sm:$0xff] }
  0x1a   :  { %1834 = vmatpush3.bf16.msra.mxu0 %v1833_v9  ;;  %v1857_v35 = vpack.c.bf16 %v137_v34, %v136_v32  ;;  %v1860_v38 = vpack.c.bf16 %v139_v37, %v138_v36  ;;  %v140_v39 = vld [vmem:[#allocation3 + $0x130] sm:$0xff]  ;;  %v141_v40 = vld [vmem:[#allocation3 + $0x138] sm:$0xff]  ;;  %v142_v42 = vld [vmem:[#allocation3 + $0x140] sm:$0xff] }
  0x1b   :  { %1835 = vmatprep.subr.bf16.mxu0 %v2200_v1  ;;  %1855 = vmatpush3.bf16.msra.mxu1 %v1854_v33  ;;  %v1863_v41 = vpack.c.bf16 %v141_v40, %v140_v39  ;;  %v143_v43 = vld [vmem:[#allocation3 + $0x148] sm:$0xff]  ;;  %v144_v45 = vld [vmem:[#allocation3 + $0x150] sm:$0xff]  ;;  %v145_v46 = vld [vmem:[#allocation3 + $0x158] sm:$0xff] }
  0x1c   :  { %1856 = vmatprep.subr.bf16.mxu1 %v2200_v1  ;;  %v1866_v44 = vpack.c.bf16 %v143_v43, %v142_v42  ;;  %v1869_v47 = vpack.c.bf16 %v145_v46, %v144_v45  ;;  %v146_v48 = vld [vmem:[#allocation3 + $0x160] sm:$0xff]  ;;  %v147_v49 = vld [vmem:[#allocation3 + $0x168] sm:$0xff]  ;;  %v148_v51 = vld [vmem:[#allocation3 + $0x170] sm:$0xff] }
  0x1d   :  { %v1872_v50 = vpack.c.bf16 %v147_v49, %v146_v48  ;;  %v149_v52 = vld [vmem:[#allocation3 + $0x178] sm:$0xff]  ;;  %v226_v57 = vld [vmem:[#allocation3 + $0x80] sm:$0xff]  ;;  %v227_v58 = vld [vmem:[#allocation3 + $0x88] sm:$0xff] }
  0x1e   :  { %1837 = vmatpush3.bf16.msra.mxu0 %v1836_v13  ;;  %v1875_v53 = vpack.c.bf16 %v149_v52, %v148_v51  ;;  %v1878_v60 = vpack.c.bf16 %v227_v58, %v226_v57  ;;  %v228_v62 = vld [vmem:[#allocation3 + $0x90] sm:$0xff]  ;;  %v229_v63 = vld [vmem:[#allocation3 + $0x98] sm:$0xff]  ;;  %v230_v3 = vld [vmem:[#allocation3 + $0xa0] sm:$0xff] }
  0x1f   :  { %1838 = vmatprep.subr.bf16.mxu0 %v2200_v1  ;;  %1858 = vmatpush3.bf16.msra.mxu1 %v1857_v35  ;;  %v1881_v2 = vpack.c.bf16 %v229_v63, %v228_v62  ;;  %v231_v4 = vld [vmem:[#allocation3 + $0xa8] sm:$0xff]  ;;  %v232_v6 = vld [vmem:[#allocation3 + $0xb0] sm:$0xff]  ;;  %v233_v7 = vld [vmem:[#allocation3 + $0xb8] sm:$0xff] }
  0x20   :  { %1859 = vmatprep.subr.bf16.mxu1 %v2200_v1  ;;  %v1884_v5 = vpack.c.bf16 %v231_v4, %v230_v3  ;;  %v1887_v8 = vpack.c.bf16 %v233_v7, %v232_v6  ;;  %v234_v9 = vld [vmem:[#allocation3 + $0xc0] sm:$0xff]  ;;  %v235_v10 = vld [vmem:[#allocation3 + $0xc8] sm:$0xff]  ;;  %v236_v12 = vld [vmem:[#allocation3 + $0xd0] sm:$0xff] }
  0x21   :  { %v1890_v11 = vpack.c.bf16 %v235_v10, %v234_v9  ;;  %v237_v13 = vld [vmem:[#allocation3 + $0xd8] sm:$0xff]  ;;  %v238_v16 = vld [vmem:[#allocation3 + $0xe0] sm:$0xff]  ;;  %v240_v19 = vld [vmem:[#allocation3 + $0xf0] sm:$0xff] }
  0x22   :  { %1840 = vmatpush3.bf16.msra.mxu0 %v1839_v17  ;;  %v1893_v15 = vpack.c.bf16 %v237_v13, %v236_v12  ;;  %v239_v17 = vld [vmem:[#allocation3 + $0xe8] sm:$0xff]  ;;  %v225_v22 = vld [vmem:[%s2489_s1] sm:$0x1]  ;;  %v320_v32 = vld [vmem:[#allocation3 + $0x1b0] sm:$0xff] }
  0x23   :  { %1841 = vmatprep.subr.bf16.mxu0 %v2200_v1  ;;  %1861 = vmatpush3.bf16.msra.mxu1 %v1860_v38  ;;  %v1896_v18 = vpack.c.bf16 %v239_v17, %v238_v16  ;;  %v315_v24 = vld [vmem:[#allocation3 + $0x188] sm:$0xff]  ;;  %v317_v27 = vld [vmem:[#allocation3 + $0x198] sm:$0xff]  ;;  %v322_v35 = vld [vmem:[#allocation3 + $0x1c0] sm:$0xff] }
  0x24   :  { %1862 = vmatprep.subr.bf16.mxu1 %v2200_v1  ;;  %v319_v30 = vld [vmem:[#allocation3 + $0x1a8] sm:$0xff]  ;;  %v321_v33 = vld [vmem:[#allocation3 + $0x1b8] sm:$0xff]  ;;  %v324_v38 = vld [vmem:[#allocation3 + $0x1d0] sm:$0xff] }
  0x25   :  { %v2299_v34 = vpack.c.bf16 %v321_v33, %v320_v32  ;;  %v323_v36 = vld [vmem:[#allocation3 + $0x1c8] sm:$0xff]  ;;  %v325_v39 = vld [vmem:[#allocation3 + $0x1d8] sm:$0xff]  ;;  %v957_v32 = vld [vmem:[#allocation3 + $0x210] sm:$0xff] }
  0x26   :  { %1843 = vmatpush3.bf16.msra.mxu0 %v1842_v20  ;;  %v241_v20 = vld [vmem:[#allocation3 + $0xf8] sm:$0xff]  ;;  %v2303_v37 = vpack.c.bf16 %v323_v36, %v322_v35  ;;  %v2307_v40 = vpack.c.bf16 %v325_v39, %v324_v38  ;;  %v327_v42 = vld [vmem:[#allocation3 + $0x1e8] sm:$0xff] }
  0x27   :  { %1844 = vmatprep.subr.bf16.mxu0 %v2200_v1  ;;  %1864 = vmatpush3.bf16.msra.mxu1 %v1863_v41  ;;  %v1899_v21 = vpack.c.bf16 %v241_v20, %v240_v19  ;;  %v326_v41 = vld [vmem:[#allocation3 + $0x1e0] sm:$0xff]  ;;  %v329_v45 = vld [vmem:[#allocation3 + $0x1f8] sm:$0xff] }
  0x28   :  { %1865 = vmatprep.subr.bf16.mxu1 %v2200_v1  ;;  %v2311_v43 = vpack.c.bf16 %v327_v42, %v326_v41  ;;  %v242_v49 = vld [vmem:[%s2491_s3] sm:$0x1]  ;;  %v959_v42 = vld [vmem:[#allocation3 + $0x220] sm:$0xff] }
  0x2a   :  { %1846 = vmatpush3.bf16.msra.mxu0 %v1845_v23  ;;  %v314_v23 = vld [vmem:[#allocation3 + $0x180] sm:$0xff] }
  0x2b   :  { %1847 = vmatprep.subr.bf16.mxu0 %v2200_v1  ;;  %1867 = vmatpush3.bf16.msra.mxu1 %v1866_v44  ;;  %v2287_v25 = vpack.c.bf16 %v315_v24, %v314_v23  ;;  %v328_v44 = vld [vmem:[#allocation3 + $0x1f0] sm:$0xff] }
  0x2c   :  { %1868 = vmatprep.subr.bf16.mxu1 %v2200_v1  ;;  %v2315_v46 = vpack.c.bf16 %v329_v45, %v328_v44  ;;  %v961_v45 = vld [vmem:[#allocation3 + $0x230] sm:$0xff] }
  0x2e   :  { %1849 = vmatpush3.bf16.msra.mxu0 %v1848_v26  ;;  %v316_v26 = vld [vmem:[#allocation3 + $0x190] sm:$0xff] }
  0x2f   :  { %1850 = vmatprep.subr.bf16.mxu0 %v2200_v1  ;;  %1870 = vmatpush3.bf16.msra.mxu1 %v1869_v47  ;;  %v2291_v28 = vpack.c.bf16 %v317_v27, %v316_v26 }
  0x30   :  { %1871 = vmatprep.subr.bf16.mxu1 %v2200_v1 }
  0x32   :  { %1852 = vmatpush3.bf16.msra.mxu0 %v1851_v29  ;;  %v318_v29 = vld [vmem:[#allocation3 + $0x1a0] sm:$0xff] }
  0x33   :  { %1877 = vmatprep.subr.bf16.mxu0 %v2200_v1  ;;  %1873 = vmatpush3.bf16.msra.mxu1 %v1872_v50  ;;  %v2295_v31 = vpack.c.bf16 %v319_v30, %v318_v29  ;;  %v955_v30 = vld [vmem:[#allocation3 + $0x200] sm:$0xff] }
  0x34   :  { %1874 = vmatprep.subr.bf16.mxu1 %v2200_v1 }
  0x37   :  { %1876 = vmatpush3.bf16.msra.mxu1 %v1875_v53 }
  0x38   :  { %1901 = vmatprep.subr.bf16.mxu1 %v2200_v1 }
  0x93   :  { %v38_v56 = vpop.permute.xlu0 %37 }
  0x98   :  { %v43_v59 = vpop.permute.xlu0 %42 }
  0x99   :  { %v44_v61 = vsel %vm39_vm1, %v43_v59, %v38_v56  ;;  %v1151_v56 = vld [vmem:[%s2491_s3 + $0x1] ss:$0 sm:$0xff] }
  0x9a   :  { %vm45_vm2 = vcmp.eq.s32.totalorder %v44_v61, %v34_v55 }
  0x9b   :  { %1407 = vmatmul.mubr.msk.f32.vlgmr.msra.gmra.mrb[0].mxu0 %vm45_vm2, %v2204_v0 }
  0x9c   :  { %1879 = vmatpush3.bf16.msra.mxu0 %v1878_v60  ;;  %1476 = vmatprep.mubr.msk.f32.mxu0 %vm2202_vm0, %v2203_v14 }
  0x9d   :  { %1880 = vmatprep.subr.bf16.mxu0 %v2200_v1 }
  0xa0   :  { %1882 = vmatpush3.bf16.msra.mxu0 %v1881_v2 }
  0xa1   :  { %1883 = vmatprep.subr.bf16.mxu0 %v2200_v1 }
  0xa4   :  { %1885 = vmatpush3.bf16.msra.mxu0 %v1884_v5 }
  0xa5   :  { %1886 = vmatprep.subr.bf16.mxu0 %v2200_v1 }
  0xa8   :  { %1888 = vmatpush3.bf16.msra.mxu0 %v1887_v8 }
  0xa9   :  { %1889 = vmatprep.subr.bf16.mxu0 %v2200_v1 }
  0xac   :  { %1891 = vmatpush3.bf16.msra.mxu0 %v1890_v11 }
  0xad   :  { %1892 = vmatprep.subr.bf16.mxu0 %v2200_v1 }
  0xb0   :  { %1894 = vmatpush3.bf16.msra.mxu0 %v1893_v15 }
  0xb1   :  { %1895 = vmatprep.subr.bf16.mxu0 %v2200_v1 }
  0xb4   :  { %1897 = vmatpush3.bf16.msra.mxu0 %v1896_v18 }
  0xb5   :  { %1898 = vmatprep.subr.bf16.mxu0 %v2200_v1 }
  0xb8   :  { %1900 = vmatpush3.bf16.msra.mxu0 %v1899_v21 }
  0xb9   :  { %1925 = vmatprep.subr.bf16.mxu0 %v2200_v1 }
  0xbb   :  { %1477 = vmatmul.mubr.f32.vlgmr.msra.gmra.mrb[2].mxu0 %v225_v22 }
  0xbc   :  { %1546 = vmatprep.mubr.msk.f32.mxu0 %vm2202_vm0, %v2203_v14  ;;  %1927 = vmatpush3.bf16.msra.mxu0 %v2287_v25 }
  0xbd   :  { %1928 = vmatprep.subr.bf16.mxu0 %v2200_v1 }
  0xc0   :  { %1930 = vmatpush3.bf16.msra.mxu0 %v2291_v28 }
  0xc1   :  { %1931 = vmatprep.subr.bf16.mxu0 %v2200_v1 }
  0xc4   :  { %1933 = vmatpush3.bf16.msra.mxu0 %v2295_v31 }
  0xc5   :  { %1934 = vmatprep.subr.bf16.mxu0 %v2200_v1 }
  0xc8   :  { %1936 = vmatpush3.bf16.msra.mxu0 %v2299_v34 }
  0xc9   :  { %1937 = vmatprep.subr.bf16.mxu0 %v2200_v1 }
  0xcc   :  { %1939 = vmatpush3.bf16.msra.mxu0 %v2303_v37 }
  0xcd   :  { %1940 = vmatprep.subr.bf16.mxu0 %v2200_v1 }
  0xd0   :  { %1942 = vmatpush3.bf16.msra.mxu0 %v2307_v40 }
  0xd1   :  { %1943 = vmatprep.subr.bf16.mxu0 %v2200_v1 }
  0xd4   :  { %1945 = vmatpush3.bf16.msra.mxu0 %v2311_v43 }
  0xd5   :  { %1946 = vmatprep.subr.bf16.mxu0 %v2200_v1 }
  0xd8   :  { %1948 = vmatpush3.bf16.msra.mxu0 %v2315_v46 }
  0xd9   :  { %1973 = vmatprep.subr.bf16.mxu0 %v2200_v1 }
 0x16e   :  { %v130_v47 = vpop.f32.mrb[0].mxu0 }
 0x16f   :  { %v1408_v48 = vpop.f32.mrb[1].mxu0  ;;  %1442 = vmatmul.mubr.f32.vlgmr.msra.gmra.mrb[0].mxu1 %v130_v47 }
 0x170   :  { %1903 = vmatpush3.bf16.msra.mxu1 %v2287_v25  ;;  %1511 = vmatprep.mubr.msk.f32.mxu1 %vm2202_vm0, %v2203_v14  ;;  %v963_v48 = vld [vmem:[#allocation3 + $0x240] sm:$0xff] }
 0x171   :  { %1904 = vmatprep.subr.bf16.mxu1 %v2200_v1 }
 0x174   :  { %1906 = vmatpush3.bf16.msra.mxu1 %v2291_v28 }
 0x175   :  { %1907 = vmatprep.subr.bf16.mxu1 %v2200_v1 }
 0x178   :  { %1909 = vmatpush3.bf16.msra.mxu1 %v2295_v31 }
 0x179   :  { %1910 = vmatprep.subr.bf16.mxu1 %v2200_v1 }
 0x17c   :  { %1912 = vmatpush3.bf16.msra.mxu1 %v2299_v34 }
 0x17d   :  { %1913 = vmatprep.subr.bf16.mxu1 %v2200_v1 }
 0x180   :  { %1915 = vmatpush3.bf16.msra.mxu1 %v2303_v37 }
 0x181   :  { %1916 = vmatprep.subr.bf16.mxu1 %v2200_v1 }
 0x184   :  { %1918 = vmatpush3.bf16.msra.mxu1 %v2307_v40 }
 0x185   :  { %1919 = vmatprep.subr.bf16.mxu1 %v2200_v1 }
 0x188   :  { %1921 = vmatpush3.bf16.msra.mxu1 %v2311_v43 }
 0x189   :  { %1922 = vmatprep.subr.bf16.mxu1 %v2200_v1 }
 0x18c   :  { %1924 = vmatpush3.bf16.msra.mxu1 %v2315_v46 }
 0x18d   :  { %1949 = vmatprep.subr.bf16.mxu1 %v2200_v1 }
 0x18e   :  { %v309_v50 = vpop.f32.mrb[2].mxu0 }
 0x18f   :  { %v310_v51 = vadd.f32 %v309_v50, %v242_v49  ;;  %v1478_v52 = vpop.f32.mrb[3].mxu0  ;;  %v964_v49 = vld [vmem:[#allocation3 + $0x248] sm:$0xff] }
 0x190   :  { %v2106_v50 = vpack.c.bf16 %v964_v49, %v963_v48 }
 0x191   :  { %v313_v53 = vmax.f32 %v310_v51, 0.0  ;;  %v965_v51 = vld [vmem:[#allocation3 + $0x250] sm:$0xff] }
 0x193   :  { %1512 = vmatmul.mubr.f32.vlgmr.msra.gmra.mrb[2].mxu1 %v313_v53  ;;  %v967_v53 = vld [vmem:[#allocation3 + $0x260] sm:$0xff] }
 0x194   :  { %1951 = vmatpush3.bf16.msra.mxu1 %v2287_v25  ;;  %1581 = vmatprep.mubr.msk.f32.mxu1 %vm2202_vm0, %v2203_v14 }
 0x195   :  { %1952 = vmatprep.subr.bf16.mxu1 %v2200_v1 }
 0x198   :  { %1954 = vmatpush3.bf16.msra.mxu1 %v2291_v28 }
 0x199   :  { %1955 = vmatprep.subr.bf16.mxu1 %v2200_v1 }
 0x19c   :  { %1957 = vmatpush3.bf16.msra.mxu1 %v2295_v31 }
 0x19d   :  { %1958 = vmatprep.subr.bf16.mxu1 %v2200_v1 }
 0x1a0   :  { %1960 = vmatpush3.bf16.msra.mxu1 %v2299_v34 }
 0x1a1   :  { %1961 = vmatprep.subr.bf16.mxu1 %v2200_v1 }
 0x1a4   :  { %1963 = vmatpush3.bf16.msra.mxu1 %v2303_v37 }
 0x1a5   :  { %1964 = vmatprep.subr.bf16.mxu1 %v2200_v1 }
 0x1a8   :  { %1966 = vmatpush3.bf16.msra.mxu1 %v2307_v40 }
 0x1a9   :  { %1967 = vmatprep.subr.bf16.mxu1 %v2200_v1 }
 0x1ac   :  { %1969 = vmatpush3.bf16.msra.mxu1 %v2311_v43 }
 0x1ad   :  { %1970 = vmatprep.subr.bf16.mxu1 %v2200_v1 }
 0x1b0   :  { %1972 = vmatpush3.bf16.msra.mxu1 %v2315_v46 }
 0x1b1   :  { %1997 = vmatprep.subr.bf16.mxu1 %v2200_v1 }
 0x242   :  { %v221_v54 = vpop.f32.mrb[0].mxu1 }
 0x243   :  { %v1443_v55 = vpop.f32.mrb[1].mxu1  ;;  %v2361_v57 = vadd.f32 %v1151_v56, %v221_v54  ;;  %v968_v54 = vld [vmem:[#allocation3 + $0x268] sm:$0xff]  ;;  %v969_v56 = vld [vmem:[#allocation3 + $0x270] sm:$0xff] }
 0x244   :  { %v2112_v55 = vpack.c.bf16 %v968_v54, %v967_v53 }
 0x266   :  { %v396_v58 = vpop.f32.mrb[2].mxu1 }
 0x267   :  { %v400_v59 = vadd.f32 %v396_v58, %v2361_v57  ;;  %v1513_v60 = vpop.f32.mrb[3].mxu1  ;;  %v970_v58 = vld [vmem:[#allocation3 + $0x278] sm:$0xff] }
 0x269   :  { %2152 = vtanh.f32 %v400_v59  ;;  %v2115_v59 = vpack.c.bf16 %v970_v58, %v969_v56 }
 0x273   :  { %v2153_v61 = vpop.eup %2152 }
 0x274   :  { %402 = vst [vmem:[#allocation2] sm:$0x1] %v2153_v61  ;;  %1547 = vmatmul.mubr.f32.vlgmr.msra.gmra.mrb[4].mxu0 %v2153_v61 }
 0x275   :  { %1975 = vmatpush3.bf16.msra.mxu0 %v2287_v25  ;;  %1616 = vmatprep.mubr.msk.f32.mxu0 %vm2202_vm0, %v2203_v14 }
 0x276   :  { %1976 = vmatprep.subr.bf16.mxu0 %v2200_v1 }
 0x279   :  { %1978 = vmatpush3.bf16.msra.mxu0 %v2291_v28 }
 0x27a   :  { %1979 = vmatprep.subr.bf16.mxu0 %v2200_v1 }
 0x27d   :  { %1981 = vmatpush3.bf16.msra.mxu0 %v2295_v31 }
 0x27e   :  { %1982 = vmatprep.subr.bf16.mxu0 %v2200_v1 }
 0x281   :  { %1984 = vmatpush3.bf16.msra.mxu0 %v2299_v34 }
 0x282   :  { %1985 = vmatprep.subr.bf16.mxu0 %v2200_v1 }
 0x285   :  { %1987 = vmatpush3.bf16.msra.mxu0 %v2303_v37 }
 0x286   :  { %1988 = vmatprep.subr.bf16.mxu0 %v2200_v1 }
 0x289   :  { %1990 = vmatpush3.bf16.msra.mxu0 %v2307_v40 }
 0x28a   :  { %1991 = vmatprep.subr.bf16.mxu0 %v2200_v1 }
 0x28d   :  { %1993 = vmatpush3.bf16.msra.mxu0 %v2311_v43 }
 0x28e   :  { %1994 = vmatprep.subr.bf16.mxu0 %v2200_v1 }
 0x291   :  { %1996 = vmatpush3.bf16.msra.mxu0 %v2315_v46 }
 0x292   :  { %2021 = vmatprep.subr.bf16.mxu0 %v2200_v1 }
 0x347   :  { %v469_v62 = vpop.f32.mrb[4].mxu0 }
 0x348   :  { %v474_v63 = vrot.slane %v469_v62, 7  ;;  %v1548_v0 = vpop.f32.mrb[5].mxu0 }
 0x34a   :  { %v476_v2 = vadd.f32 %v474_v63, %v2361_v57 }
 0x34c   :  { %2154 = vtanh.f32 %v476_v2 }
 0x356   :  { %v2155_v3 = vpop.eup %2154 }
 0x357   :  { %478 = vst [vmem:[#allocation2] sm:$0x2] %v2155_v3  ;;  %v480_v4 = vrot.slane %v2155_v3, 1  ;;  %v1051_v3 = vld [vmem:[#allocation3 + $0x280] sm:$0xff] }
 0x359   :  { %1582 = vmatmul.mubr.f32.vlgmr.msra.gmra.mrb[4].mxu1 %v480_v4  ;;  %v1052_v4 = vld [vmem:[#allocation3 + $0x288] sm:$0xff] }
 0x35a   :  { %1999 = vmatpush3.bf16.msra.mxu1 %v2287_v25  ;;  %1651 = vmatprep.mubr.msk.f32.mxu1 %vm2202_vm0, %v2203_v14 }
 0x35b   :  { %2000 = vmatprep.subr.bf16.mxu1 %v2200_v1 }
 0x35e   :  { %2002 = vmatpush3.bf16.msra.mxu1 %v2291_v28 }
 0x35f   :  { %2003 = vmatprep.subr.bf16.mxu1 %v2200_v1 }
 0x362   :  { %2005 = vmatpush3.bf16.msra.mxu1 %v2295_v31 }
 0x363   :  { %2006 = vmatprep.subr.bf16.mxu1 %v2200_v1 }
 0x366   :  { %2008 = vmatpush3.bf16.msra.mxu1 %v2299_v34 }
 0x367   :  { %2009 = vmatprep.subr.bf16.mxu1 %v2200_v1 }
 0x36a   :  { %2011 = vmatpush3.bf16.msra.mxu1 %v2303_v37 }
 0x36b   :  { %2012 = vmatprep.subr.bf16.mxu1 %v2200_v1 }
 0x36e   :  { %2014 = vmatpush3.bf16.msra.mxu1 %v2307_v40 }
 0x36f   :  { %2015 = vmatprep.subr.bf16.mxu1 %v2200_v1 }
 0x372   :  { %2017 = vmatpush3.bf16.msra.mxu1 %v2311_v43 }
 0x373   :  { %2018 = vmatprep.subr.bf16.mxu1 %v2200_v1 }
 0x376   :  { %2020 = vmatpush3.bf16.msra.mxu1 %v2315_v46 }
 0x377   :  { %2045 = vmatprep.subr.bf16.mxu1 %v2200_v1 }
 0x42c   :  { %v548_v5 = vpop.f32.mrb[4].mxu1 }
 0x42d   :  { %v553_v6 = vrot.slane %v548_v5, 6  ;;  %v1583_v7 = vpop.f32.mrb[5].mxu1  ;;  %v1053_v5 = vld [vmem:[#allocation3 + $0x290] sm:$0xff] }
 0x42e   :  { %v1054_v7 = vld [vmem:[#allocation3 + $0x298] sm:$0xff] }
 0x42f   :  { %v555_v8 = vadd.f32 %v553_v6, %v2361_v57  ;;  %v2118_v6 = vpack.c.bf16 %v1052_v4, %v1051_v3 }
 0x431   :  { %2156 = vtanh.f32 %v555_v8  ;;  %v2121_v8 = vpack.c.bf16 %v1054_v7, %v1053_v5 }
 0x43b   :  { %v2157_v9 = vpop.eup %2156 }
 0x43c   :  { %557 = vst [vmem:[#allocation2] sm:$0x4] %v2157_v9  ;;  %v559_v10 = vrot.slane %v2157_v9, 2  ;;  %v1055_v9 = vld [vmem:[#allocation3 + $0x2a0] sm:$0xff] }
 0x43e   :  { %1617 = vmatmul.mubr.f32.vlgmr.msra.gmra.mrb[6].mxu0 %v559_v10 }
 0x43f   :  { %2023 = vmatpush3.bf16.msra.mxu0 %v2287_v25  ;;  %1686 = vmatprep.mubr.msk.f32.mxu0 %vm2202_vm0, %v2203_v14 }
 0x440   :  { %2024 = vmatprep.subr.bf16.mxu0 %v2200_v1 }
 0x443   :  { %2026 = vmatpush3.bf16.msra.mxu0 %v2291_v28 }
 0x444   :  { %2027 = vmatprep.subr.bf16.mxu0 %v2200_v1 }
 0x447   :  { %2029 = vmatpush3.bf16.msra.mxu0 %v2295_v31 }
 0x448   :  { %2030 = vmatprep.subr.bf16.mxu0 %v2200_v1 }
 0x44b   :  { %2032 = vmatpush3.bf16.msra.mxu0 %v2299_v34 }
 0x44c   :  { %2033 = vmatprep.subr.bf16.mxu0 %v2200_v1 }
 0x44f   :  { %2035 = vmatpush3.bf16.msra.mxu0 %v2303_v37 }
 0x450   :  { %2036 = vmatprep.subr.bf16.mxu0 %v2200_v1 }
 0x453   :  { %2038 = vmatpush3.bf16.msra.mxu0 %v2307_v40 }
 0x454   :  { %2039 = vmatprep.subr.bf16.mxu0 %v2200_v1 }
 0x457   :  { %2041 = vmatpush3.bf16.msra.mxu0 %v2311_v43 }
 0x458   :  { %2042 = vmatprep.subr.bf16.mxu0 %v2200_v1 }
 0x45b   :  { %2044 = vmatpush3.bf16.msra.mxu0 %v2315_v46 }
 0x45c   :  { %2069 = vmatprep.subr.bf16.mxu0 %v2200_v1 }
 0x511   :  { %v627_v11 = vpop.f32.mrb[6].mxu0 }
 0x512   :  { %v632_v12 = vrot.slane %v627_v11, 5  ;;  %v1618_v13 = vpop.f32.mrb[7].mxu0  ;;  %v1057_v11 = vld [vmem:[#allocation3 + $0x2b0] sm:$0xff] }
 0x514   :  { %v634_v15 = vadd.f32 %v632_v12, %v2361_v57  ;;  %v1058_v12 = vld [vmem:[#allocation3 + $0x2b8] sm:$0xff] }
 0x515   :  { %v2127_v13 = vpack.c.bf16 %v1058_v12, %v1057_v11 }
 0x516   :  { %2158 = vtanh.f32 %v634_v15  ;;  %v1152_v15 = vld [vmem:[%s2491_s3 + $0x2] ss:$0 sm:$0xff] }
 0x520   :  { %v2159_v16 = vpop.eup %2158 }
 0x521   :  { %636 = vst [vmem:[#allocation2] sm:$0x8] %v2159_v16  ;;  %v638_v17 = vrot.slane %v2159_v16, 3 }
 0x523   :  { %1652 = vmatmul.mubr.f32.vlgmr.msra.gmra.mrb[6].mxu1 %v638_v17 }
 0x524   :  { %2047 = vmatpush3.bf16.msra.mxu1 %v2287_v25  ;;  %1721 = vmatprep.mubr.msk.f32.mxu1 %vm2202_vm0, %v2203_v14 }
 0x525   :  { %2048 = vmatprep.subr.bf16.mxu1 %v2200_v1 }
 0x528   :  { %2050 = vmatpush3.bf16.msra.mxu1 %v2291_v28 }
 0x529   :  { %2051 = vmatprep.subr.bf16.mxu1 %v2200_v1 }
 0x52c   :  { %2053 = vmatpush3.bf16.msra.mxu1 %v2295_v31 }
 0x52d   :  { %2054 = vmatprep.subr.bf16.mxu1 %v2200_v1 }
 0x530   :  { %2056 = vmatpush3.bf16.msra.mxu1 %v2299_v34 }
 0x531   :  { %2057 = vmatprep.subr.bf16.mxu1 %v2200_v1 }
 0x534   :  { %2059 = vmatpush3.bf16.msra.mxu1 %v2303_v37 }
 0x535   :  { %2060 = vmatprep.subr.bf16.mxu1 %v2200_v1 }
 0x538   :  { %2062 = vmatpush3.bf16.msra.mxu1 %v2307_v40 }
 0x539   :  { %2063 = vmatprep.subr.bf16.mxu1 %v2200_v1 }
 0x53c   :  { %2065 = vmatpush3.bf16.msra.mxu1 %v2311_v43 }
 0x53d   :  { %2066 = vmatprep.subr.bf16.mxu1 %v2200_v1 }
 0x540   :  { %2068 = vmatpush3.bf16.msra.mxu1 %v2315_v46 }
 0x541   :  { %2093 = vmatprep.subr.bf16.mxu1 %v2200_v1 }
 0x5f6   :  { %v706_v18 = vpop.f32.mrb[6].mxu1 }
 0x5f7   :  { %v711_v19 = vrot.slane %v706_v18, 4  ;;  %v1653_v20 = vpop.f32.mrb[7].mxu1 }
 0x5f8   :  { %v1060_v20 = vld [vmem:[#allocation3 + $0x2c8] sm:$0xff] }
 0x5f9   :  { %v713_v21 = vadd.f32 %v711_v19, %v2361_v57  ;;  %v1059_v19 = vld [vmem:[#allocation3 + $0x2c0] sm:$0xff] }
 0x5fb   :  { %2160 = vtanh.f32 %v713_v21  ;;  %v2130_v21 = vpack.c.bf16 %v1060_v20, %v1059_v19 }
 0x605   :  { %v2161_v22 = vpop.eup %2160 }
 0x606   :  { %715 = vst [vmem:[#allocation2] sm:$0x10] %v2161_v22  ;;  %v717_v23 = vrot.slane %v2161_v22, 4  ;;  %v1061_v22 = vld [vmem:[#allocation3 + $0x2d0] sm:$0xff] }
 0x608   :  { %1687 = vmatmul.mubr.f32.vlgmr.msra.gmra.mrb[8].mxu0 %v717_v23  ;;  %v1062_v23 = vld [vmem:[#allocation3 + $0x2d8] sm:$0xff] }
 0x609   :  { %2071 = vmatpush3.bf16.msra.mxu0 %v2287_v25  ;;  %1756 = vmatprep.mubr.msk.f32.mxu0 %vm2202_vm0, %v2203_v14 }
 0x60a   :  { %2072 = vmatprep.subr.bf16.mxu0 %v2200_v1 }
 0x60d   :  { %2074 = vmatpush3.bf16.msra.mxu0 %v2291_v28 }
 0x60e   :  { %2075 = vmatprep.subr.bf16.mxu0 %v2200_v1 }
 0x611   :  { %2077 = vmatpush3.bf16.msra.mxu0 %v2295_v31  ;;  %v956_v31 = vld [vmem:[#allocation3 + $0x208] sm:$0xff] }
 0x612   :  { %2078 = vmatprep.subr.bf16.mxu0 %v2200_v1  ;;  %v2094_v33 = vpack.c.bf16 %v956_v31, %v955_v30 }
 0x615   :  { %2080 = vmatpush3.bf16.msra.mxu0 %v2299_v34  ;;  %v958_v34 = vld [vmem:[#allocation3 + $0x218] sm:$0xff] }
 0x616   :  { %2081 = vmatprep.subr.bf16.mxu0 %v2200_v1  ;;  %v2097_v35 = vpack.c.bf16 %v958_v34, %v957_v32 }
 0x619   :  { %2083 = vmatpush3.bf16.msra.mxu0 %v2303_v37 }
 0x61a   :  { %2084 = vmatprep.subr.bf16.mxu0 %v2200_v1 }
 0x61d   :  { %2086 = vmatpush3.bf16.msra.mxu0 %v2307_v40 }
 0x61e   :  { %2087 = vmatprep.subr.bf16.mxu0 %v2200_v1 }
 0x621   :  { %2089 = vmatpush3.bf16.msra.mxu0 %v2311_v43  ;;  %v960_v43 = vld [vmem:[#allocation3 + $0x228] sm:$0xff] }
 0x622   :  { %2090 = vmatprep.subr.bf16.mxu0 %v2200_v1  ;;  %v2100_v44 = vpack.c.bf16 %v960_v43, %v959_v42 }
 0x625   :  { %2092 = vmatpush3.bf16.msra.mxu0 %v2315_v46  ;;  %v962_v46 = vld [vmem:[#allocation3 + $0x238] sm:$0xff] }
 0x626   :  { %2117 = vmatprep.subr.bf16.mxu0 %v2200_v1  ;;  %v2103_v47 = vpack.c.bf16 %v962_v46, %v961_v45 }
 0x6db   :  { %v785_v24 = vpop.f32.mrb[8].mxu0 }
 0x6dc   :  { %v790_v25 = vrot.slane %v785_v24, 3  ;;  %v1688_v26 = vpop.f32.mrb[9].mxu0  ;;  %v2133_v24 = vpack.c.bf16 %v1062_v23, %v1061_v22 }
 0x6dd   :  { %v1064_v26 = vld [vmem:[#allocation3 + $0x2e8] sm:$0xff] }
 0x6de   :  { %v792_v27 = vadd.f32 %v790_v25, %v2361_v57  ;;  %v1063_v25 = vld [vmem:[#allocation3 + $0x2e0] sm:$0xff] }
 0x6e0   :  { %2162 = vtanh.f32 %v792_v27  ;;  %v2136_v27 = vpack.c.bf16 %v1064_v26, %v1063_v25 }
 0x6ea   :  { %v2163_v28 = vpop.eup %2162 }
 0x6eb   :  { %794 = vst [vmem:[#allocation2] sm:$0x20] %v2163_v28  ;;  %v796_v29 = vrot.slane %v2163_v28, 5  ;;  %v1065_v28 = vld [vmem:[#allocation3 + $0x2f0] sm:$0xff] }
 0x6ed   :  { %1722 = vmatmul.mubr.f32.vlgmr.msra.gmra.mrb[8].mxu1 %v796_v29  ;;  %v1066_v29 = vld [vmem:[#allocation3 + $0x2f8] sm:$0xff] }
 0x6ee   :  { %1791 = vmatprep.mubr.msk.f32.mxu1 %vm2202_vm0, %v2203_v14  ;;  %2095 = vmatpush3.bf16.msra.mxu1 %v2094_v33  ;;  %v2139_v30 = vpack.c.bf16 %v1066_v29, %v1065_v28 }
 0x6ef   :  { %2096 = vmatprep.subr.bf16.mxu1 %v2200_v1 }
 0x6f2   :  { %2098 = vmatpush3.bf16.msra.mxu1 %v2097_v35 }
 0x6f3   :  { %2099 = vmatprep.subr.bf16.mxu1 %v2200_v1 }
 0x6f6   :  { %2101 = vmatpush3.bf16.msra.mxu1 %v2100_v44 }
 0x6f7   :  { %2102 = vmatprep.subr.bf16.mxu1 %v2200_v1 }
 0x6fa   :  { %2104 = vmatpush3.bf16.msra.mxu1 %v2103_v47 }
 0x6fb   :  { %2105 = vmatprep.subr.bf16.mxu1 %v2200_v1 }
 0x6fe   :  { %2107 = vmatpush3.bf16.msra.mxu1 %v2106_v50 }
 0x6ff   :  { %2108 = vmatprep.subr.bf16.mxu1 %v2200_v1 }
 0x7c0   :  { %v864_v36 = vpop.f32.mrb[8].mxu1 }
 0x7c1   :  { %v869_v37 = vrot.slane %v864_v36, 2  ;;  %v1723_v38 = vpop.f32.mrb[9].mxu1 }
 0x7c3   :  { %v871_v39 = vadd.f32 %v869_v37, %v2361_v57 }
 0x7c5   :  { %2164 = vtanh.f32 %v871_v39 }
 0x7cf   :  { %v2165_v40 = vpop.eup %2164 }
 0x7d0   :  { %873 = vst [vmem:[#allocation2] sm:$0x40] %v2165_v40  ;;  %v875_v41 = vrot.slane %v2165_v40, 6 }
 0x7d2   :  { %1757 = vmatmul.mubr.f32.vlgmr.msra.gmra.mrb[10].mxu0 %v875_v41 }
 0x7d3   :  { %1826 = vmatprep.mubr.msk.f32.mxu0 %vm2202_vm0, %v2203_v14  ;;  %v966_v14 = vld [vmem:[#allocation3 + $0x258] sm:$0xff]  ;;  %2119 = vmatpush3.bf16.msra.mxu0 %v2118_v6 }
 0x7d4   :  { %v2109_v52 = vpack.c.bf16 %v966_v14, %v965_v51  ;;  %2120 = vmatprep.subr.bf16.mxu0 %v2200_v1 }
 0x7d6   :  { %2110 = vmatpush3.bf16.msra.mxu1 %v2109_v52 }
 0x7d7   :  { %2111 = vmatprep.subr.bf16.mxu1 %v2200_v1  ;;  %2122 = vmatpush3.bf16.msra.mxu0 %v2121_v8 }
 0x7d8   :  { %2123 = vmatprep.subr.bf16.mxu0 %v2200_v1 }
 0x7da   :  { %2113 = vmatpush3.bf16.msra.mxu1 %v2112_v55 }
 0x7db   :  { %2114 = vmatprep.subr.bf16.mxu1 %v2200_v1 }
 0x7de   :  { %2116 = vmatpush3.bf16.msra.mxu1 %v2115_v59 }
 0x8a5   :  { %v943_v60 = vpop.f32.mrb[10].mxu0 }
 0x8a6   :  { %v948_v61 = vrot.slane %v943_v60, 1  ;;  %v1758_v62 = vpop.f32.mrb[11].mxu0 }
 0x8a8   :  { %v950_v63 = vadd.f32 %v948_v61, %v2361_v57  ;;  %v1056_v57 = vld [vmem:[#allocation3 + $0x2a8] sm:$0xff] }
 0x8a9   :  { %v2124_v10 = vpack.c.bf16 %v1056_v57, %v1055_v9 }
 0x8aa   :  { %2166 = vtanh.f32 %v950_v63 }
 0x8ab   :  { %2125 = vmatpush3.bf16.msra.mxu0 %v2124_v10 }
 0x8ac   :  { %2126 = vmatprep.subr.bf16.mxu0 %v2200_v1 }
 0x8af   :  { %2128 = vmatpush3.bf16.msra.mxu0 %v2127_v13 }
 0x8b0   :  { %2129 = vmatprep.subr.bf16.mxu0 %v2200_v1 }
 0x8b3   :  { %2131 = vmatpush3.bf16.msra.mxu0 %v2130_v21 }
 0x8b4   :  { %v2167_v0 = vpop.eup %2166  ;;  %2132 = vmatprep.subr.bf16.mxu0 %v2200_v1 }
 0x8b5   :  { %952 = vst [vmem:[#allocation2] sm:$0x80] %v2167_v0  ;;  %953 = vst [vmem:[%s2493_s5 - $0x7] sm:$0x80] %v2167_v0 }
 0x8b7   :  { %2134 = vmatpush3.bf16.msra.mxu0 %v2133_v24 }
 0x8b8   :  { %2135 = vmatprep.subr.bf16.mxu0 %v2200_v1 }
 0x8bb   :  { %2137 = vmatpush3.bf16.msra.mxu0 %v2136_v27 }
 0x8bc   :  { %v954_v2 = vld [vmem:[#allocation2] sm:$0xff]  ;;  %2138 = vmatprep.subr.bf16.mxu0 %v2200_v1 }
 0x8bd   :  { %1792 = vmatmul.mubr.f32.vlgmr.msra.gmra.mrb[10].mxu1 %v954_v2 }
 0x8bf   :  { %2140 = vmatpush3.bf16.msra.mxu0 %v2139_v30 }
 0x990   :  { %v1042_v16 = vpop.f32.mrb[10].mxu1 }
 0x991   :  { %v1043_v17 = vadd.f32 %v1152_v15, %v1042_v16  ;;  %v1793_v18 = vpop.f32.mrb[11].mxu1 }
 0x993   :  { %1046 = vmax.xlane.f32.xlu1 %v1043_v17 }
 0xa20   :  { %v1047_v31 = vpop.xlane.xlu1 %1046 }
 0xa21   :  { %v1048_v32 = vsub.f32 %v1043_v17, %v1047_v31 }
 0xa23   :  { %v1049_v33 = vmul.f32 1.442695, %v1048_v32 }
 0xa25   :  { %2168 = vpow2.f32 %v1049_v33 }
 0xa2f   :  { %v2169_v34 = vpop.eup %2168 }
 0xa30   :  { %1827 = vmatmul.mubr.f32.vlgmr.msra.gmra.mrb[12].mxu0 %v2169_v34 }
 0xb03   :  { %v1133_v35 = vpop.f32.mrb[12].mxu0 }
 0xb04   :  { %2170 = vrcp.f32 %v1133_v35  ;;  %v1828_v36 = vpop.f32.mrb[13].mxu0 }
 0xb0e   :  { %v2171_v37 = vpop.eup %2170 }
 0xb0f   :  { %v1138_v38 = vmul.f32 %v2171_v37, %v2169_v34 }
 0xb11   :  { %1139 = vst [vmem:[%s2492_s4] sm:$0xff] %v1138_v38 }
 0xb12   :  { %1148 = vsyncpa [#allocation4], 1 }

</bundles_post_ra>
